<compile_context>
chip_gen: v7x
topology: tpu7x:2x2x1
jax: 0.10.0
libtpu: 0.0.40
codegen_flags: <defaults>
</compile_context>

<pallas_src>
import functools

import jax
import jax.numpy as jnp
from jax import lax
from jax.experimental import pallas as pl
from jax.experimental.pallas import tpu as pltpu

f32 = jnp.float32
bf16 = jnp.bfloat16
VMEM = pltpu.MemorySpace.VMEM


def _round_up(n, m):
    return ((n + m - 1) // m) * m


# ----------------------------- Pallas kernels --------------------------------

def _linear_kernel(x_ref, w_ref, b_ref, o_ref, *, act):
    y = jnp.dot(x_ref[...].astype(bf16), w_ref[...].astype(bf16),
                preferred_element_type=jnp.float32) + b_ref[...]
    if act == "relu":
        y = jnp.maximum(y, 0.0)
    elif act == "tanh":
        y = jnp.tanh(y)
    o_ref[...] = y.astype(o_ref.dtype)


def linear(x, w, b, act="none"):
    """y = act(x @ w + b); x:(M,K), w:(K,N), b:(1,N). M is tiled when large."""
    M, K = x.shape
    N = w.shape[1]
    block_m = 128 if (M >= 256 and M % 128 == 0) else M
    gm = M // block_m
    return pl.pallas_call(
        functools.partial(_linear_kernel, act=act),
        out_shape=jax.ShapeDtypeStruct((M, N), f32),
        grid=(gm,),
        in_specs=[pl.BlockSpec((block_m, K), lambda i: (i, 0)),
                  pl.BlockSpec((K, N), lambda i: (0, 0)),
                  pl.BlockSpec((1, N), lambda i: (0, 0))],
        out_specs=pl.BlockSpec((block_m, N), lambda i: (i, 0)),
        compiler_params=pltpu.CompilerParams(
            dimension_semantics=("parallel",)),
    )(x, w, b)


def _bmm_kernel(a_ref, b_ref, o_ref):
    o_ref[...] = jnp.einsum("bmk,bkn->bmn", a_ref[...], b_ref[...],
                            preferred_element_type=jnp.float32)


def bmm(a, b):
    """Batched matmul: (B,M,K) @ (B,K,N) -> (B,M,N)."""
    B, M, _ = a.shape
    N = b.shape[2]
    return pl.pallas_call(
        _bmm_kernel,
        out_shape=jax.ShapeDtypeStruct((B, M, N), f32),
        in_specs=[pl.BlockSpec(memory_space=VMEM)] * 2,
        out_specs=pl.BlockSpec(memory_space=VMEM),
    )(a, b)


def _bilstm_kernel(u_ref, wh_ref, of_ref, ob_ref):
    """Fused bidirectional LSTM over the whole sequence.

    u_ref : (T, B, 8H)  precomputed x@Wi + b with gate-major, [fwd|bwd] interleave:
            columns of gate k are [k*2H : k*2H+H] = fwd, [k*2H+H : (k+1)*2H] = bwd,
            and the bwd projection at step t is for original time T-1-t.
    wh_ref: (2H, 8H)    block-diagonal recurrent weight in the same layout.
    """
    T, B, H8 = u_ref.shape
    H2 = H8 // 4        # both-direction hidden (2H)
    H = H2 // 2
    wh = wh_ref[...]

    def step(t, carry):
        h_all, c_all = carry                                    # (B, 2H) each, [fwd|bwd]
        g = u_ref[t] + jnp.dot(h_all, wh, preferred_element_type=jnp.float32)
        i = jax.nn.sigmoid(g[:, 0 * H2:1 * H2])
        f = jax.nn.sigmoid(g[:, 1 * H2:2 * H2])
        gt = jnp.tanh(g[:, 2 * H2:3 * H2])
        o = jax.nn.sigmoid(g[:, 3 * H2:4 * H2])
        c_new = f * c_all + i * gt
        h_new = o * jnp.tanh(c_new)
        of_ref[t] = h_new[:, :H]                                # fwd output at time t
        ob_ref[T - 1 - t] = h_new[:, H:]                        # bwd output at time T-1-t
        return h_new, c_new

    z = jnp.zeros((B, H2), jnp.float32)
    lax.fori_loop(0, T, step, (z, z))


def bilstm(u_all, wh_all):
    T, B, H8 = u_all.shape
    H = H8 // 8
    return pl.pallas_call(
        _bilstm_kernel,
        out_shape=(jax.ShapeDtypeStruct((T, B, H), f32),
                   jax.ShapeDtypeStruct((T, B, H), f32)),
        in_specs=[pl.BlockSpec(memory_space=VMEM)] * 2,
        out_specs=(pl.BlockSpec(memory_space=VMEM),) * 2,
    )(u_all, wh_all)


def _decoder_kernel(feats_ref, xproj_ref, s0_ref, gi_emb_ref,
                    sW_ref, sB_ref, wE_ref, wEb_ref,
                    wic_ref, wh_ref, bh_ref, fcw_ref, fcb_ref,
                    pred_ref, att_ref, st_ref):
    """Fused AttentionRecognitionHead: attention + GRU over all decode steps,
    then one batched classifier matmul with a lane-dense (padded) output."""
    L = gi_emb_ref.shape[0]
    B, T, C = feats_ref.shape
    S = s0_ref.shape[1]
    feats = feats_ref[...]
    xproj = xproj_ref[...]
    sW = sW_ref[...]
    sB = sB_ref[...]
    wE = wE_ref[...]                     # (1, attDim)
    wic = wic_ref[...]                   # (C, 3S)
    wh = wh_ref[...]                     # (S, 3S)
    bh = bh_ref[...]                     # (1, 3S)

    def step(i, s):
        # attention unit: alpha = softmax(tanh(xProj + sProj) . wE)
        sproj = jnp.dot(s, sW, preferred_element_type=jnp.float32) + sB     # (B, A)
        e = jnp.tanh(xproj + sproj[:, None, :])                             # (B, T, A)
        scores = jnp.sum(e * wE[None, :, :], axis=-1) + wEb_ref[...]        # VPU reduce, (B, T)
        scores = scores - jnp.max(scores, axis=1, keepdims=True)
        ew = jnp.exp(scores)
        alpha = ew / jnp.sum(ew, axis=1, keepdims=True)
        att_ref[i] = alpha
        ctx = jnp.sum(alpha[:, :, None] * feats, axis=1)                    # (B, C)
        # GRU cell; y_emb @ Wi (+bi) was precomputed for all steps (gi_emb_ref)
        gi = gi_emb_ref[i] + jnp.dot(ctx, wic, preferred_element_type=jnp.float32)
        gh = jnp.dot(s, wh, preferred_element_type=jnp.float32) + bh
        r = jax.nn.sigmoid(gi[:, 0:S] + gh[:, 0:S])
        z = jax.nn.sigmoid(gi[:, S:2 * S] + gh[:, S:2 * S])
        n = jnp.tanh(gi[:, 2 * S:3 * S] + r * gh[:, 2 * S:3 * S])
        s_new = (1.0 - z) * n + z * s
        st_ref[i] = s_new
        return s_new

    lax.fori_loop(0, L, step, s0_ref[...])

    states = st_ref[...].reshape(L * B, S)
    logits = jnp.dot(states.astype(bf16), fcw_ref[...].astype(bf16),
                     preferred_element_type=jnp.float32) + fcb_ref[...]
    pred_ref[...] = logits.reshape(L, B, -1)


def _radical_kernel(h0_ref, gi_ref, wh_ref, bh_ref, fcw_ref, fcb_ref,
                    out_ref, st_ref):
    """Fused radical GRU decoder over max_rad_len steps + batched classifier head."""
    R, M, _ = gi_ref.shape
    S = h0_ref.shape[1]
    wh = wh_ref[...]
    bh = bh_ref[...]

    def step(r, h):
        gi = gi_ref[r]                                                      # (M, 3S)
        gh = jnp.dot(h, wh, preferred_element_type=jnp.float32) + bh
        rr = jax.nn.sigmoid(gi[:, 0:S] + gh[:, 0:S])
        z = jax.nn.sigmoid(gi[:, S:2 * S] + gh[:, S:2 * S])
        n = jnp.tanh(gi[:, 2 * S:3 * S] + rr * gh[:, 2 * S:3 * S])
        h_new = (1.0 - z) * n + z * h
        st_ref[r] = h_new
        return h_new

    lax.fori_loop(0, R, step, h0_ref[...])

    states = st_ref[...].reshape(R * M, S)
    logits = jnp.dot(states.astype(bf16), fcw_ref[...].astype(bf16),
                     preferred_element_type=jnp.float32) + fcb_ref[...]
    out_ref[...] = logits.reshape(R, M, -1)


# ------------------------------- glue / model --------------------------------

def conv2d_relu(x_nhwc, w, b, stride, pad):
    """3x3 conv as im2col (glue) + tiled Pallas matmul (hot path). w:(9*Cin, Cout)."""
    B, H, W, C = x_nhwc.shape
    kh = kw = 3
    xp = jnp.pad(x_nhwc, ((0, 0), (pad, pad), (pad, pad), (0, 0)))
    oh = (H + 2 * pad - kh) // stride + 1
    ow = (W + 2 * pad - kw) // stride + 1
    cols = []
    for i in range(kh):
        for j in range(kw):
            cols.append(xp[:, i:i + stride * oh:stride, j:j + stride * ow:stride, :])
    patches = jnp.concatenate(cols, axis=-1).reshape(B * oh * ow, kh * kw * C)
    y = linear(patches, w, b, act="relu")
    return y.reshape(B, oh, ow, -1)


def encoder_forward(p, x_nchw):
    # TODO(synk): real encoder is ResNet_ASTER(with_lstm, n_group); reduced here to a
    # 2-layer conv stack + height pooling + fused BiLSTM with the same (B, T, C) interface.
    x = jnp.transpose(x_nchw, (0, 2, 3, 1))                       # NCHW -> NHWC
    f1 = conv2d_relu(x, p["conv1_w"], p["conv1_b"], stride=2, pad=1)
    f2 = conv2d_relu(f1, p["conv2_w"], p["conv2_b"], stride=2, pad=1)
    cnn_seq = jnp.mean(f2, axis=1)                                # (B, T, C) collapse height
    radical_feats = cnn_seq                                       # pre-LSTM CNN sequence feats

    B, T, C2 = cnn_seq.shape
    H = C2 // 2

    # hoist BOTH directions' input projections into one (B*T, C2) x (C2, 8H) matmul
    wi_cat = jnp.concatenate([p["lstm_f_wi"], p["lstm_b_wi"]], axis=1)   # (C2, 8H)
    b_cat = jnp.concatenate([p["lstm_f_b"], p["lstm_b_b"]], axis=1)      # (1, 8H)
    proj = linear(cnn_seq.reshape(B * T, C2), wi_cat, b_cat)             # (B*T, 8H)
    proj = proj.reshape(B, T, 8 * H).transpose(1, 0, 2)                  # (T, B, 8H)
    proj_f = proj[:, :, :4 * H]                                          # time t
    proj_b = proj[::-1, :, 4 * H:]                                       # time T-1-t at step t
    pf = proj_f.reshape(T, B, 4, H)
    pb = proj_b.reshape(T, B, 4, H)
    u_all = jnp.stack([pf, pb], axis=3).reshape(T, B, 8 * H)             # gate-major [f|b]

    # block-diagonal recurrent weight in the same gate-major [f|b] layout
    wf = p["lstm_f_wh"].reshape(H, 4, 1, H)
    wb = p["lstm_b_wh"].reshape(H, 4, 1, H)
    zero = jnp.zeros_like(wf)
    top = jnp.concatenate([wf, zero], axis=2).reshape(H, 8 * H)
    bot = jnp.concatenate([zero, wb], axis=2).reshape(H, 8 * H)
    wh_all = jnp.concatenate([top, bot], axis=0)                         # (2H, 8H)

    out_f, out_b = bilstm(u_all, wh_all)                                 # (T, B, H) each
    encoder_feats = jnp.concatenate([out_f, out_b], axis=-1).transpose(1, 0, 2)  # (B, T, C2)
    return encoder_feats, radical_feats


def embedder_forward(p, feats):
    B = feats.shape[0]
    return linear(feats.reshape(B, -1), p["embed_w"], p["embed_b"])


def decoder_forward(p, feats, rec_targets, embed_vec, max_len, num_classes):
    """AttentionRecognitionHead: semantic-initialized GRU + attention, teacher forcing,
    fused into a single Pallas kernel over the decode loop."""
    # TODO(synk): decode loop length is the static max_len_labels; torch uses max(rec_lengths).
    B, T, C = feats.shape
    A = p["att_xW"].shape[1]
    S = p["embed2state_w"].shape[1]
    emd = p["tgt_emb"].shape[1]
    L = max_len

    xproj = linear(feats.reshape(B * T, C), p["att_xW"], p["att_xB"]).reshape(B, T, A)
    s0 = linear(embed_vec, p["embed2state_w"], p["embed2state_b"], act="tanh")   # (B, S)

    # pre-gather teacher-forced embeddings and pre-project them through Wi (+bi)
    sos = jnp.full((1, B), num_classes, jnp.int32)
    prev = jnp.concatenate([sos, rec_targets[:, :L - 1].T], axis=0)      # (L, B)
    y_emb = jnp.take(p["tgt_emb"], prev.reshape(-1), axis=0)            # (L*B, emd)
    gi_emb = linear(y_emb, p["dec_gru_wi"][:emd, :], p["dec_gru_bi"]).reshape(L, B, 3 * S)
    wi_ctx = p["dec_gru_wi"][emd:, :]                                    # (C, 3S)

    ncp = _round_up(num_classes, 128)                                    # lane-dense head
    fcw = jnp.pad(p["dec_fc_w"], ((0, 0), (0, ncp - num_classes)))
    fcb = jnp.pad(p["dec_fc_b"], ((0, 0), (0, ncp - num_classes)))

    pred, att = pl.pallas_call(
        _decoder_kernel,
        out_shape=(jax.ShapeDtypeStruct((L, B, ncp), f32),
                   jax.ShapeDtypeStruct((L, B, T), f32)),
        in_specs=[pl.BlockSpec(memory_space=VMEM)] * 13,
        out_specs=(pl.BlockSpec(memory_space=VMEM),) * 2,
        scratch_shapes=[pltpu.VMEM((L, B, S), f32)],
    )(feats, xproj, s0, gi_emb,
      p["att_sW"], p["att_sB"], p["att_wE"].T, p["att_wEb"],
      wi_ctx, p["dec_gru_wh"], p["dec_gru_bh"], fcw, fcb)

    rec_pred = pred.transpose(1, 0, 2)[:, :, :num_classes]               # (B, L, nc)
    att_map = att.transpose(1, 0, 2)                                     # (B, L, T)
    return rec_pred, att_map


def radical_branch_forward(p, att_map, radical_feats, radical_input, length_radical,
                           radical_classes, max_rad_len):
    """RadicalBranch: character-level attended context drives a fused radical GRU decoder."""
    # TODO(synk): length_radical only bounds the loss in the original; static max_rad_len used here.
    B, L, T = att_map.shape
    C = radical_feats.shape[-1]
    S = p["rad_gru_wh"].shape[0]
    R = max_rad_len

    rad_proj = linear(radical_feats.reshape(B * T, C),
                      p["rad_proj_w"], p["rad_proj_b"]).reshape(B, T, -1)
    char_ctx = bmm(att_map, rad_proj)                                    # (B, L, Cr)
    Cr = char_ctx.shape[-1]
    h0 = linear(char_ctx.reshape(B * L, Cr), p["rad_ctx2h_w"], p["rad_ctx2h_b"], act="tanh")

    # pre-gather teacher-forced radical embeddings, pre-project through Wi (+bi)
    sos = jnp.full((1, B * L), radical_classes, jnp.int32)
    prev = jnp.concatenate(
        [sos, radical_input[:, :, :R - 1].reshape(B * L, R - 1).T], axis=0)   # (R, B*L)
    y_emb = jnp.take(p["rad_emb"], prev.reshape(-1), axis=0)                  # (R*B*L, S)
    gi_all = linear(y_emb, p["rad_gru_wi"], p["rad_gru_bi"]).reshape(R, B * L, 3 * S)

    rcp = _round_up(radical_classes, 128)
    fcw = jnp.pad(p["rad_fc_w"], ((0, 0), (0, rcp - radical_classes)))
    fcb = jnp.pad(p["rad_fc_b"], ((0, 0), (0, rcp - radical_classes)))

    out = pl.pallas_call(
        _radical_kernel,
        out_shape=jax.ShapeDtypeStruct((R, B * L, rcp), f32),
        in_specs=[pl.BlockSpec(memory_space=VMEM)] * 6,
        out_specs=pl.BlockSpec(memory_space=VMEM),
        scratch_shapes=[pltpu.VMEM((R, B * L, S), f32)],
    )(h0, gi_all, p["rad_gru_wh"], p["rad_gru_bh"], fcw, fcb)

    rad_pred = out[:, :, :radical_classes].reshape(R, B, L, radical_classes)
    return rad_pred.transpose(1, 2, 0, 3)                                # (B, L, R, rc)


def model_builder_forward(p, input_dict, cfg):
    # TODO(synk): STN_ON branch (TPSSpatialTransformer + STNHead) not implemented; default path.
    x = input_dict["images"]
    rec_targets = input_dict["rec_targets"]
    radical_input = input_dict["radical_input"]
    length_radical = input_dict["length_radical"]

    encoder_feats, radical_feats = encoder_forward(p, x)
    embedding_vectors = embedder_forward(p, encoder_feats)
    rec_pred, att_map = decoder_forward(p, encoder_feats, rec_targets, embedding_vectors,
                                        cfg["max_len_labels"], cfg["rec_num_classes"])
    radical_decoder_result = radical_branch_forward(
        p, att_map, radical_feats, radical_input, length_radical,
        cfg["radical_classes"], cfg["max_rad_len"])
    return rec_pred, att_map, radical_decoder_result, embedding_vectors


# ------------------------------ parameter init --------------------------------

def init_params(key, cfg):
    keys = iter(jax.random.split(key, 64))

    def nrm(shape, scale=0.1):
        return (jax.random.normal(next(keys), shape, f32) * scale).astype(f32)

    C1, C2 = 16, cfg["out_planes"]          # conv channels; out_planes = encoder feature dim
    H = C2 // 2                             # per-direction LSTM hidden
    sDim, attDim = cfg["sDim"], cfg["attDim"]
    emd = cfg["emdDim"]
    nc = cfg["rec_num_classes"]
    rc = cfg["radical_classes"]
    ed = cfg["embed_dim"]
    T = cfg["time_step"]

    return {
        # encoder
        "conv1_w": nrm((9 * 3, C1)), "conv1_b": nrm((1, C1)),
        "conv2_w": nrm((9 * C1, C2)), "conv2_b": nrm((1, C2)),
        "lstm_f_wi": nrm((C2, 4 * H)), "lstm_f_wh": nrm((H, 4 * H)), "lstm_f_b": nrm((1, 4 * H)),
        "lstm_b_wi": nrm((C2, 4 * H)), "lstm_b_wh": nrm((H, 4 * H)), "lstm_b_b": nrm((1, 4 * H)),
        # embeder (semantic embedding)
        "embed_w": nrm((T * C2, ed)), "embed_b": nrm((1, ed)),
        # decoder (AttentionRecognitionHead)
        "embed2state_w": nrm((ed, sDim)), "embed2state_b": nrm((1, sDim)),
        "att_xW": nrm((C2, attDim)), "att_xB": nrm((1, attDim)),
        "att_sW": nrm((sDim, attDim)), "att_sB": nrm((1, attDim)),
        "att_wE": nrm((attDim, 1)), "att_wEb": nrm((1, 1)),
        "tgt_emb": nrm((nc + 1, emd)),
        "dec_gru_wi": nrm((emd + C2, 3 * sDim)), "dec_gru_wh": nrm((sDim, 3 * sDim)),
        "dec_gru_bi": nrm((1, 3 * sDim)), "dec_gru_bh": nrm((1, 3 * sDim)),
        "dec_fc_w": nrm((sDim, nc)), "dec_fc_b": nrm((1, nc)),
        # radical branch
        "rad_proj_w": nrm((C2, sDim)), "rad_proj_b": nrm((1, sDim)),
        "rad_ctx2h_w": nrm((sDim, sDim)), "rad_ctx2h_b": nrm((1, sDim)),
        "rad_emb": nrm((rc + 1, sDim)),
        "rad_gru_wi": nrm((sDim, 3 * sDim)), "rad_gru_wh": nrm((sDim, 3 * sDim)),
        "rad_gru_bi": nrm((1, 3 * sDim)), "rad_gru_bh": nrm((1, 3 * sDim)),
        "rad_fc_w": nrm((sDim, rc)), "rad_fc_b": nrm((1, rc)),
    }


# ----------------------------------- main -------------------------------------

if __name__ == "__main__":
    cfg = dict(
        rec_num_classes=37,
        sDim=32,
        attDim=32,
        emdDim=32,
        embed_dim=64,
        max_len_labels=6,
        time_step=8,          # width of feature sequence produced by the reduced encoder
        out_planes=32,
        radical_classes=48,
        max_rad_len=4,
    )

    B, Cin, Him, Wim = 2, 3, 16, 32

    key = jax.random.PRNGKey(0)
    k_img, k_tgt, k_rad, k_par = jax.random.split(key, 4)

    input_dict = {
        "images": jax.random.normal(k_img, (B, Cin, Him, Wim), f32),
        "rec_targets": jax.random.randint(k_tgt, (B, cfg["max_len_labels"]), 0,
                                          cfg["rec_num_classes"], dtype=jnp.int32),
        "rec_lengths": jnp.full((B,), cfg["max_len_labels"], jnp.int32),
        "radical_input": jax.random.randint(k_rad, (B, cfg["max_len_labels"], cfg["max_rad_len"]),
                                            0, cfg["radical_classes"], dtype=jnp.int32),
        "length_radical": jnp.full((B, cfg["max_len_labels"]), cfg["max_rad_len"], jnp.int32),
    }

    params = init_params(k_par, cfg)

    rec_pred, att_map, radical_out, embedding_vectors = model_builder_forward(
        params, input_dict, cfg)
    jax.block_until_ready((rec_pred, att_map, radical_out, embedding_vectors))

    assert rec_pred.shape == (B, cfg["max_len_labels"], cfg["rec_num_classes"])
    assert att_map.shape == (B, cfg["max_len_labels"], cfg["time_step"])
    assert radical_out.shape == (B, cfg["max_len_labels"], cfg["max_rad_len"],
                                 cfg["radical_classes"])
    assert embedding_vectors.shape == (B, cfg["embed_dim"])

    print("KERNEL_OK")
</pallas_src>

<mosaic_0001>
module attributes {stable_mosaic.version = 11 : i64} {
  func.func @_linear_kernel(%arg0: i32, %arg1: memref<128x27xf32, #tpu.memory_space<vmem>>, %arg2: memref<27x16xf32, #tpu.memory_space<vmem>>, %arg3: memref<1x16xf32, #tpu.memory_space<vmem>>, %arg4: memref<128x16xf32, #tpu.memory_space<vmem>>) attributes {dimension_semantics = [#tpu.dimension_semantics<parallel>], iteration_bounds = array<i64: 2>, scalar_prefetch = 0 : i64, scratch_operands = 0 : i64, tpu.core_type = #tpu.core_type<tc>, window_params = [{transform_indices = @transform_0, window_bounds = array<i64: 128, 27>}, {pipeline_mode = #tpu.pipeline_mode<synchronous>, transform_indices = @transform_1, window_bounds = array<i64: 27, 16>}, {pipeline_mode = #tpu.pipeline_mode<synchronous>, transform_indices = @transform_2, window_bounds = array<i64: 1, 16>}, {transform_indices = @transform_3, window_bounds = array<i64: 128, 16>}]} {
    %c0 = arith.constant 0 : index
    %c0_0 = arith.constant 0 : index
    %0 = vector.load %arg1[%c0, %c0_0] : memref<128x27xf32, #tpu.memory_space<vmem>>, vector<128x27xf32>
    %1 = arith.truncf %0 : vector<128x27xf32> to vector<128x27xbf16>
    %c0_1 = arith.constant 0 : index
    %c0_2 = arith.constant 0 : index
    %2 = vector.load %arg2[%c0_1, %c0_2] : memref<27x16xf32, #tpu.memory_space<vmem>>, vector<27x16xf32>
    %3 = arith.truncf %2 : vector<27x16xf32> to vector<27x16xbf16>
    %cst = arith.constant dense<0.000000e+00> : vector<128x16xf32>
    %4 = tpu.matmul %1, %3, %cst {dimension_numbers = #tpu.dot_dimension_numbers<[1], [0], [0], [1], [0, 0, 1, 1], [], []>} : vector<128x27xbf16>, vector<27x16xbf16>, vector<128x16xf32> -> vector<128x16xf32>
    %c0_3 = arith.constant 0 : index
    %c0_4 = arith.constant 0 : index
    %5 = vector.load %arg3[%c0_3, %c0_4] : memref<1x16xf32, #tpu.memory_space<vmem>>, vector<1x16xf32>
    %6 = vector.broadcast %5 : vector<1x16xf32> to vector<128x16xf32>
    %7 = arith.addf %4, %6 : vector<128x16xf32>
    %cst_5 = arith.constant 0.000000e+00 : f32
    %8 = vector.broadcast %cst_5 : f32 to vector<128x16xf32>
    %9 = arith.maximumf %7, %8 : vector<128x16xf32>
    %c0_6 = arith.constant 0 : index
    %c0_7 = arith.constant 0 : index
    %10 = vector.load %arg4[%c0_6, %c0_7] : memref<128x16xf32, #tpu.memory_space<vmem>>, vector<128x16xf32>
    tpu.vector_store %arg4[%c0_6, %c0_7], %9 {strides = array<i32>} : memref<128x16xf32, #tpu.memory_space<vmem>>, vector<128x16xf32>,
    return
  }
  func.func @transform_0(%arg0: i32) -> (i32, i32) {
    %c0_i32 = arith.constant 0 : i32
    %c0_i32_0 = arith.constant 0 : i32
    return %arg0, %c0_i32 : i32, i32
  }
  func.func @transform_1(%arg0: i32) -> (i32, i32) {
    %c0_i32 = arith.constant 0 : i32
    %c0_i32_0 = arith.constant 0 : i32
    %c0_i32_1 = arith.constant 0 : i32
    return %c0_i32, %c0_i32_0 : i32, i32
  }
  func.func @transform_2(%arg0: i32) -> (i32, i32) {
    %c0_i32 = arith.constant 0 : i32
    %c0_i32_0 = arith.constant 0 : i32
    %c0_i32_1 = arith.constant 0 : i32
    return %c0_i32, %c0_i32_0 : i32, i32
  }
  func.func @transform_3(%arg0: i32) -> (i32, i32) {
    %c0_i32 = arith.constant 0 : i32
    %c0_i32_0 = arith.constant 0 : i32
    return %arg0, %c0_i32 : i32, i32
  }
}

</mosaic_0001>

<bundles_post_ra>
// kernel: tpu_custom_call.1
= control target key start
LH: loop header
LB: loop body
LE: loop exit
PB: predicated region body
PF: predicated region fallthrough
CT: control target
= control target key end

     0   :  { %s522_s12 = smov 0   ;;  %s621_s0 = inlined_call_operand.vmem [shape: f32[256,27], index: 0, kind: input, shape index: {}]   ;;  %s622_s1 = inlined_call_operand.vmem [shape: f32[27,16], index: 1, kind: input, shape index: {}]   ;;  %s623_s2 = inlined_call_operand.vmem [shape: f32[1,16], index: 2, kind: input, shape index: {}]   ;;  %s624_s3 = inlined_call_operand.vmem [shape: f32[256,16], index: 3, kind: output, shape index: {}]  }
   0x1 LB: > { %s430_s13 = sadd.s32 4294967295, %s499_s12   ;;  %p434_p0 = scmp.ge.s32.totalorder %s499_s12, 1  ;;  %s499_s12 = sphi %s522_s12, %s13_s12  }
   0x2   : > { %p138_p1 = scmp.lt.s32.totalorder %s499_s12, 3 }
   0x4   : > { %p139_p2 = pnand %p434_p0, %p138_p1 }
   0x5   : > { %v199_v0 = vld [vmem:[%s622_s1] sm:$0xff] (!%p139_p2)  ;;  %v200_v1 = vld [vmem:[%s622_s1 + $0x8] sm:$0xff] (!%p139_p2)  ;;  %v201_v2 = vld [vmem:[%s622_s1 + $0x10] sm:$0xff] (!%p139_p2)  ;;  %vm237_vm0 = vcmask (!%p139_p2), 1044480   ;;  %vm238_vm1 = vcmask (!%p139_p2), 1045504   ;;  %v501_v5 = vmov (!%p139_p2), 65535  }
   0x6   : > { %142 = sbr.rel (%p139_p2) target bundleno = 249 (0xf9), region = 32  ;;  %v203_v3 = vpack.c.bf16 (!%p139_p2), %v200_v1, %v199_v0  ;;  %v202_v4 = vld [vmem:[%s622_s1 + $0x18] sm:$0x7] (!%p139_p2)  ;;  %v239_v6 = vsel (!%p139_p2), %vm237_vm0, 4294967295, %v501_v5  ;;  %s435_s22 = sshll.u32 (!%p139_p2), %s430_s13, 4  ;;  %vm212_vm2 = vcmask (!%p139_p2), 220160  }
   0x7   : > { %v204_v7 = vpack.c.bf16 (!%p139_p2), %v202_v4, %v201_v2  ;;  %v240_v8 = vsel (!%p139_p2), %vm238_vm1, %v239_v6, 0  ;;  %p163_p3 = scmp.lt.s32.totalorder (!%p139_p2), %s435_s22, 31  ;;  %v439_v34 = vld [vmem:[%s623_s2] ss:$0 sm:$0xff] (!%p139_p2)  ;;  %vm357_vm3 = vcmask (!%p139_p2), 130048  }
   0x8   : > { %460 = vmatprep.subr.bf16.mxu0 (!%p139_p2), %v203_v3  ;;  %480 = vmatprep.subr.bf16.mxu1 (!%p139_p2), %v203_v3 }
   0x9   : > { %461 = vmatpush3.bf16.msra.mxu0 (!%p139_p2), %v203_v3  ;;  %482 = vmatpush3.bf16.msra.mxu1 (!%p139_p2), %v203_v3  ;;  %v242_v9 = vand.u32 (!%p139_p2), %v240_v8, %v204_v7 }
   0xb   : > { %462 = vmatprep.subr.bf16.mxu0 (!%p139_p2), %v242_v9  ;;  %481 = vmatprep.subr.bf16.mxu1 (!%p139_p2), %v242_v9 }
   0xd   : > { %s626_s22 = smov (!%p163_p3, %s435_s22), 31  ;;  %463 = vmatpush3.bf16.msra.mxu0 %v242_v9  ;;  %483 = vmatpush3.bf16.msra.mxu1 %v242_v9 }
   0xe   : > { %s436_s23 = sshll.u32 %s626_s22, 3 }
   0xf   : > { %s550_s26 = scalar_lea.vmem %s621_s0, %s436_s23  ;;  %s584_s4 = scalar_lea.vmem %s624_s3, %s436_s23 }
  0x10   : > { %v175_v10 = vld [vmem:[%s550_s26] sm:$0xff]  ;;  %v176_v11 = vld [vmem:[%s550_s26 + $0x8] sm:$0xff]  ;;  %v177_v15 = vld [vmem:[%s550_s26 + $0x10] sm:$0xff] }
  0x11   : > { %v183_v12 = vld [vmem:[%s550_s26 + $0x40] sm:$0xff]  ;;  %v191_v13 = vpack.c.bf16 %v176_v11, %v175_v10  ;;  %v184_v14 = vld [vmem:[%s550_s26 + $0x48] sm:$0xff]  ;;  %v178_v16 = vld [vmem:[%s550_s26 + $0x18] sm:$0xff] }
  0x12   : > { %v195_v17 = vpack.c.bf16 %v184_v14, %v183_v12  ;;  %v192_v18 = vpack.c.bf16 %v178_v16, %v177_v15  ;;  %v185_v19 = vld [vmem:[%s550_s26 + $0x50] sm:$0xff]  ;;  %v186_v20 = vld [vmem:[%s550_s26 + $0x58] sm:$0xff]  ;;  %v179_v21 = vld [vmem:[%s550_s26 + $0x20] sm:$0xff] }
  0x13   : > { %464 = vmatprep.mubr.msk.bf16.mxu0 %vm212_vm2, %v191_v13  ;;  %v196_v22 = vpack.c.bf16 %v186_v20, %v185_v19  ;;  %v180_v23 = vld [vmem:[%s550_s26 + $0x28] sm:$0xff]  ;;  %v187_v24 = vld [vmem:[%s550_s26 + $0x60] sm:$0xff]  ;;  %v181_v28 = vld [vmem:[%s550_s26 + $0x30] sm:$0xff] }
  0x14   : > { %v188_v25 = vld [vmem:[%s550_s26 + $0x68] sm:$0xff]  ;;  %472 = vmatprep.mubr.msk.bf16.mxu1 %vm212_vm2, %v195_v17  ;;  %465 = vmatmul.mubr.msk.bf16.vlgmr.msra.gmra.mrb[0].mxu0 %vm212_vm2, %v192_v18  ;;  %v193_v26 = vpack.c.bf16 %v180_v23, %v179_v21  ;;  %v182_v29 = vld [vmem:[%s550_s26 + $0x38] sm:$0xff]  ;;  %v189_v30 = vld [vmem:[%s550_s26 + $0x70] sm:$0xff] }
  0x15   : > { %v197_v27 = vpack.c.bf16 %v188_v25, %v187_v24  ;;  %473 = vmatmul.mubr.msk.bf16.vlgmr.msra.gmra.mrb[0].mxu1 %vm212_vm2, %v196_v22  ;;  %v190_v31 = vld [vmem:[%s550_s26 + $0x78] sm:$0xff]  ;;  %v194_v32 = vpack.c.bf16 %v182_v29, %v181_v28 }
  0x16   : > { %468 = vmatprep.mubr.msk.bf16.mxu0 %vm212_vm2, %v193_v26  ;;  %v198_v33 = vpack.c.bf16 %v190_v31, %v189_v30 }
  0x17   : > { %476 = vmatprep.mubr.msk.bf16.mxu1 %vm212_vm2, %v197_v27 }
  0x1c   : > { %469 = vmatmul.mubr.msk.bf16.gmra.mrb[4].mxu0 %vm212_vm2, %v194_v32 }
  0x1d   : > { %477 = vmatmul.mubr.msk.bf16.gmra.mrb[4].mxu1 %vm212_vm2, %v198_v33 }
  0xe7   : > { %v466_v35 = vpop.f32.mrb[0].mxu0 }
  0xe8   : > { %v287_v36 = vadd.f32 %v466_v35, %v439_v34  ;;  %v474_v37 = vpop.f32.mrb[0].mxu1  ;;  %v278_v38 = vpop.f32.mrb[1].mxu0 }
  0xe9   : > { %v319_v39 = vadd.f32 %v474_v37, %v439_v34  ;;  %v279_v40 = vadd.f32 %v439_v34, %v278_v38  ;;  %v310_v41 = vpop.f32.mrb[1].mxu1  ;;  %v467_v42 = vpop.f32.mrb[2].mxu0 }
  0xea   : > { %v343_v43 = vmax.f32 %v287_v36, 0.0  ;;  %v311_v44 = vadd.f32 %v439_v34, %v310_v41  ;;  %v290_v45 = vadd.f32 %v467_v42, %v439_v34  ;;  %v475_v46 = vpop.f32.mrb[2].mxu1  ;;  %v281_v47 = vpop.f32.mrb[3].mxu0 }
  0xeb   : > { %v351_v48 = vmax.f32 %v319_v39, 0.0  ;;  %v341_v49 = vmax.f32 %v279_v40, 0.0  ;;  %v322_v50 = vadd.f32 %v475_v46, %v439_v34  ;;  %v282_v51 = vadd.f32 %v439_v34, %v281_v47  ;;  %v313_v52 = vpop.f32.mrb[3].mxu1 }
  0xec   : > { %360 = vst.msk [vmem:[%s584_s4 + $0x10] sm:$0xff] %vm357_vm3, %v343_v43  ;;  %v349_v53 = vmax.f32 %v311_v44, 0.0  ;;  %v344_v54 = vmax.f32 %v290_v45, 0.0  ;;  %v314_v55 = vadd.f32 %v439_v34, %v313_v52 }
  0xed   : > { %368 = vst.msk [vmem:[%s584_s4 + $0x50] sm:$0xff] %vm357_vm3, %v351_v48  ;;  %358 = vst.msk [vmem:[%s584_s4] sm:$0xff] %vm357_vm3, %v341_v49  ;;  %v352_v56 = vmax.f32 %v322_v50, 0.0  ;;  %v342_v57 = vmax.f32 %v282_v51, 0.0 }
  0xee   : > { %366 = vst.msk [vmem:[%s584_s4 + $0x40] sm:$0xff] %vm357_vm3, %v349_v53  ;;  %361 = vst.msk [vmem:[%s584_s4 + $0x18] sm:$0xff] %vm357_vm3, %v344_v54  ;;  %v350_v58 = vmax.f32 %v314_v55, 0.0 }
  0xef   : > { %369 = vst.msk [vmem:[%s584_s4 + $0x58] sm:$0xff] %vm357_vm3, %v352_v56  ;;  %359 = vst.msk [vmem:[%s584_s4 + $0x8] sm:$0xff] %vm357_vm3, %v342_v57  ;;  %v470_v59 = vpop.f32.mrb[4].mxu0 }
  0xf0   : > { %367 = vst.msk [vmem:[%s584_s4 + $0x48] sm:$0xff] %vm357_vm3, %v350_v58  ;;  %v303_v60 = vadd.f32 %v470_v59, %v439_v34  ;;  %v478_v61 = vpop.f32.mrb[4].mxu1  ;;  %v294_v62 = vpop.f32.mrb[5].mxu0 }
  0xf1   : > { %v335_v63 = vadd.f32 %v478_v61, %v439_v34  ;;  %v295_v0 = vadd.f32 %v439_v34, %v294_v62  ;;  %v326_v1 = vpop.f32.mrb[5].mxu1  ;;  %v471_v2 = vpop.f32.mrb[6].mxu0 }
  0xf2   : > { %v347_v3 = vmax.f32 %v303_v60, 0.0  ;;  %v327_v4 = vadd.f32 %v439_v34, %v326_v1  ;;  %v306_v5 = vadd.f32 %v471_v2, %v439_v34  ;;  %v479_v6 = vpop.f32.mrb[6].mxu1  ;;  %v297_v7 = vpop.f32.mrb[7].mxu0 }
  0xf3   : > { %v355_v8 = vmax.f32 %v335_v63, 0.0  ;;  %v345_v9 = vmax.f32 %v295_v0, 0.0  ;;  %v338_v10 = vadd.f32 %v479_v6, %v439_v34  ;;  %v298_v11 = vadd.f32 %v439_v34, %v297_v7  ;;  %v329_v12 = vpop.f32.mrb[7].mxu1 }
  0xf4   : > { %364 = vst.msk [vmem:[%s584_s4 + $0x30] sm:$0xff] %vm357_vm3, %v347_v3  ;;  %v353_v13 = vmax.f32 %v327_v4, 0.0  ;;  %v348_v14 = vmax.f32 %v306_v5, 0.0  ;;  %v330_v15 = vadd.f32 %v439_v34, %v329_v12 }
  0xf5   : > { %372 = vst.msk [vmem:[%s584_s4 + $0x70] sm:$0xff] %vm357_vm3, %v355_v8  ;;  %362 = vst.msk [vmem:[%s584_s4 + $0x20] sm:$0xff] %vm357_vm3, %v345_v9  ;;  %v356_v16 = vmax.f32 %v338_v10, 0.0  ;;  %v346_v17 = vmax.f32 %v298_v11, 0.0 }
  0xf6   : > { %370 = vst.msk [vmem:[%s584_s4 + $0x60] sm:$0xff] %vm357_vm3, %v353_v13  ;;  %365 = vst.msk [vmem:[%s584_s4 + $0x38] sm:$0xff] %vm357_vm3, %v348_v14  ;;  %v354_v18 = vmax.f32 %v330_v15, 0.0 }
  0xf7   : > { %373 = vst.msk [vmem:[%s584_s4 + $0x78] sm:$0xff] %vm357_vm3, %v356_v16  ;;  %363 = vst.msk [vmem:[%s584_s4 + $0x28] sm:$0xff] %vm357_vm3, %v346_v17 }
  0xf8   : > { %371 = vst.msk [vmem:[%s584_s4 + $0x68] sm:$0xff] %vm357_vm3, %v354_v18 }
  0xf9 PF: > { %s13_s12 = sadd.s32 1, %s499_s12  }
  0xfa   : > { %p10_p4 = scmp.ge.s32.totalorder %s13_s12, 4  }
  0xfc   :  { %12 = sbr.rel (!%p10_p4) target bundleno = 1 (0x1), region = 62 }

</bundles_post_ra>
